<compile_context>
chip_gen: v6e
topology: v6e:2x2x1
jax: 0.10.0
libtpu: 0.0.40
codegen_flags: <defaults>
</compile_context>

<pallas_src>
import jax
import jax.numpy as jnp
from jax.experimental import pallas as pl
from jax.experimental.pallas import tpu as pltpu


def _round_up(v, m):
    return ((v + m - 1) // m) * m


def _vmem_cap_bytes():
    # Generation-aware cap with ~25% headroom (v7x has only 64 MiB per TC).
    try:
        return int(pltpu.get_tpu_info().vmem_capacity_bytes * 3 // 4)
    except Exception:
        return 48 << 20


def lrm_kernel(x_ref, w_ref, b_ref, o_ref):
    # x: (TB, F)   w: (1, F)   b: (1,) in SMEM   o: (TB, 1)
    # VPU broadcast-multiply + XLU lane reduction (no degenerate N=1 MXU
    # matmul, no large intermediate).  Accumulation in f32.
    y = jnp.sum(x_ref[...].astype(jnp.float32) * w_ref[...],
                axis=-1, keepdims=True)
    o_ref[...] = (y + b_ref[0]).astype(o_ref.dtype)


def lrm_forward(x, w1, b1, w2, b2, *, block_b=None):
    """Fused LRM forward pass.

    x:  (B, F)
    w1: (F, 2F)   (transpose of PyTorch linear1.weight)
    b1: (1, 2F) or (2F,)
    w2: (1, 2F)   (PyTorch linear2.weight as-is)
    b2: (1,)
    Returns (B,) float32 — matches the module's squeeze(-1).
    """
    B, F = x.shape

    # --- collapse the affine chain once (tiny: F*2F FLOPs, done in f32) ----
    w_eff = (w1.astype(jnp.float32) @ w2[0].astype(jnp.float32)).reshape(1, F)
    b_eff = (b1.reshape(-1).astype(jnp.float32) @ w2[0].astype(jnp.float32)
             + b2[0]).reshape(1).astype(jnp.float32)

    # --- batch tiling (no padding; ragged last block handled by masking) ---
    x_isz = x.dtype.itemsize
    cap = _vmem_cap_bytes()
    if block_b is None:
        # ~1 MiB of x per tile (step-overhead amortized), capped at 8192 rows,
        # but keep >= ~8 grid steps when B is large (megacore + pipelining).
        target = max(512, min(8192, (1 << 20) // max(1, F * x_isz)))
        per_chunk = _round_up(pl.cdiv(B, 8), 8)
        block_b = max(8, min(_round_up(target, 8), per_chunk))
    block_b = max(8, _round_up(block_b, 8))
    # Keep the double-buffered x tile well inside the VMEM cap.
    max_rows = max(8, ((cap // 4) // max(1, F * x_isz)) // 8 * 8)
    block_b = min(block_b, max_rows)

    grid_b = pl.cdiv(B, block_b)

    # x double-buffer + resident w_eff + double-buffered output column.
    est = 2 * block_b * F * x_isz + F * 4 + 2 * block_b * 4
    vmem_limit = int(min(cap, max(16 << 20, 2 * est)))

    cost = pl.CostEstimate(
        flops=2 * B * F + B,
        transcendentals=0,
        bytes_accessed=int(B * F * x_isz + F * 4 + 4 + B * 4),
    )

    out = pl.pallas_call(
        lrm_kernel,
        out_shape=jax.ShapeDtypeStruct((B, 1), jnp.float32),
        grid_spec=pltpu.PrefetchScalarGridSpec(
            num_scalar_prefetch=0,
            grid=(grid_b,),
            in_specs=[
                pl.BlockSpec((block_b, F), lambda i: (i, 0)),       # x (streamed)
                pl.BlockSpec((1, F), lambda i: (0, 0)),             # w_eff (resident)
                pl.BlockSpec(memory_space=pltpu.MemorySpace.SMEM),  # b_eff scalar
            ],
            out_specs=pl.BlockSpec((block_b, 1), lambda i: (i, 0)),
        ),
        compiler_params=pltpu.CompilerParams(
            dimension_semantics=("parallel",),
            vmem_limit_bytes=vmem_limit,
        ),
        cost_estimate=cost,
    )(x, w_eff, b_eff)

    return out[:, 0]  # squeeze(-1)


def init_lrm_params(key, n_feature):
    """Deterministic parameter init (PyTorch-style uniform bounds)."""
    k1, k2, k3, k4 = jax.random.split(key, 4)
    hidden = n_feature * 2
    bound1 = 1.0 / (n_feature ** 0.5)
    bound2 = 1.0 / (hidden ** 0.5)
    # w1 stored as (in, out) = transpose of PyTorch's (out, in) layout.
    w1 = jax.random.uniform(k1, (n_feature, hidden), jnp.float32, -bound1, bound1)
    b1 = jax.random.uniform(k2, (1, hidden), jnp.float32, -bound1, bound1)
    w2 = jax.random.uniform(k3, (1, hidden), jnp.float32, -bound2, bound2)
    b2 = jax.random.uniform(k4, (1,), jnp.float32, -bound2, bound2)
    return w1, b1, w2, b2


def lrm_reference(x, w1, b1, w2, b2):
    h = x @ w1 + b1
    return h @ w2[0] + b2[0]


if __name__ == "__main__":
    n_feature = 32
    key = jax.random.PRNGKey(0)
    kx1, kx2, kp = jax.random.split(key, 3)

    w1, b1, w2, b2 = init_lrm_params(kp, n_feature)

    # (1) tiny batch (module-spec usage), single grid step
    x_small = jax.random.normal(kx1, (8, n_feature), dtype=jnp.float32)
    out_small = jax.block_until_ready(lrm_forward(x_small, w1, b1, w2, b2))
    ref_small = lrm_reference(x_small, w1, b1, w2, b2)
    assert out_small.shape == (8,)
    assert jnp.allclose(out_small, ref_small, atol=1e-4, rtol=1e-4)

    # (2) multi-tile batch with a ragged last block (no wrapper padding)
    x_big = jax.random.normal(kx2, (300, n_feature), dtype=jnp.float32)
    out_big = jax.block_until_ready(lrm_forward(x_big, w1, b1, w2, b2))
    ref_big = lrm_reference(x_big, w1, b1, w2, b2)
    assert out_big.shape == (300,)
    assert jnp.allclose(out_big, ref_big, atol=1e-4, rtol=1e-4)

    # (3) explicit block_b, grid = cdiv(300, 128) = 3 with masked tail
    out_128 = jax.block_until_ready(
        lrm_forward(x_big, w1, b1, w2, b2, block_b=128))
    assert out_128.shape == (300,)
    assert jnp.allclose(out_128, ref_big, atol=1e-4, rtol=1e-4)

    print("KERNEL_OK")
</pallas_src>

<mosaic_0001>
module attributes {stable_mosaic.version = 11 : i64} {
  func.func @lrm_kernel(%arg0: i32, %arg1: memref<8x32xf32, #tpu.memory_space<vmem>>, %arg2: memref<1x32xf32, #tpu.memory_space<vmem>>, %arg3: memref<1xf32, #tpu.memory_space<smem>>, %arg4: memref<8x1xf32, #tpu.memory_space<vmem>>) attributes {dimension_semantics = [#tpu.dimension_semantics<parallel>], iteration_bounds = array<i64: 1>, scalar_prefetch = 0 : i64, scratch_operands = 0 : i64, tpu.core_type = #tpu.core_type<tc>, window_params = [{transform_indices = @transform_0, window_bounds = array<i64: 8, 32>}, {pipeline_mode = #tpu.pipeline_mode<synchronous>, transform_indices = @transform_1, window_bounds = array<i64: 1, 32>}, {transform_indices = @transform_2, window_bounds = array<i64: 1>}, {transform_indices = @transform_3, window_bounds = array<i64: 8, 1>}]} {
    %c0 = arith.constant 0 : index
    %c0_0 = arith.constant 0 : index
    %0 = vector.load %arg1[%c0, %c0_0] : memref<8x32xf32, #tpu.memory_space<vmem>>, vector<8x32xf32>
    %c0_1 = arith.constant 0 : index
    %c0_2 = arith.constant 0 : index
    %1 = vector.load %arg2[%c0_1, %c0_2] : memref<1x32xf32, #tpu.memory_space<vmem>>, vector<1x32xf32>
    %2 = vector.broadcast %1 : vector<1x32xf32> to vector<8x32xf32>
    %3 = arith.mulf %0, %2 : vector<8x32xf32>
    %cst = arith.constant dense<0.000000e+00> : vector<8xf32>
    %4 = vector.multi_reduction <add>, %3, %cst [1] : vector<8x32xf32> to vector<8xf32>
    %5 = vector.shape_cast %4 : vector<8xf32> to vector<8x1xf32>
    %c0_3 = arith.constant 0 : index
    %6 = memref.load %arg3[%c0_3] : memref<1xf32, #tpu.memory_space<smem>>
    %7 = vector.broadcast %6 : f32 to vector<8x1xf32>
    %8 = arith.addf %5, %7 : vector<8x1xf32>
    %c0_4 = arith.constant 0 : index
    %c0_5 = arith.constant 0 : index
    %9 = vector.load %arg4[%c0_4, %c0_5] : memref<8x1xf32, #tpu.memory_space<vmem>>, vector<8x1xf32>
    tpu.vector_store %arg4[%c0_4, %c0_5], %8 {strides = array<i32>} : memref<8x1xf32, #tpu.memory_space<vmem>>, vector<8x1xf32>,
    return
  }
  func.func @transform_0(%arg0: i32) -> (i32, i32) {
    %c0_i32 = arith.constant 0 : i32
    %c0_i32_0 = arith.constant 0 : i32
    return %arg0, %c0_i32 : i32, i32
  }
  func.func @transform_1(%arg0: i32) -> (i32, i32) {
    %c0_i32 = arith.constant 0 : i32
    %c0_i32_0 = arith.constant 0 : i32
    %c0_i32_1 = arith.constant 0 : i32
    return %c0_i32, %c0_i32_0 : i32, i32
  }
  func.func @transform_2(%arg0: i32) -> i32 {
    %c0_i32 = arith.constant 0 : i32
    %c0_i32_0 = arith.constant 0 : i32
    return %c0_i32 : i32
  }
  func.func @transform_3(%arg0: i32) -> (i32, i32) {
    %c0_i32 = arith.constant 0 : i32
    %c0_i32_0 = arith.constant 0 : i32
    return %arg0, %c0_i32 : i32, i32
  }
}

</mosaic_0001>

<bundles_post_ra>
// kernel: tpu_custom_call.1
= control target key start
LH: loop header
LB: loop body
LE: loop exit
PB: predicated region body
PF: predicated region fallthrough
CT: control target
= control target key end

     0   :  { %9 = vsyncpa [#allocation4], 0  ;;  %s74_s12 = smov [#allocation3]   ;;  %s107_s0 = inlined_call_operand.hbm [shape: f32[8,32], index: 0, kind: input, shape index: {}]   ;;  %s108_s1 = inlined_call_operand.vmem [shape: f32[1,32], index: 1, kind: input, shape index: {}]   ;;  %s109_s2 = inlined_call_operand.<no memory space> [shape: f32[1], index: 2, kind: input, shape index: {}]   ;;  %s110_s3 = inlined_call_operand.vmem [shape: f32[8,1], index: 3, kind: output, shape index: {}]  }
   0x1   :  { %s16_s13 = sshll.u32 %s74_s12, 4  ;;  %s17_s13 = int_to_ptr.vmem [resolvable:$true] %s16_s13 }
   0x2   :  { %s60_s14 = scalar_lea.vmem %s17_s13, 128  ;;  %p65_p1 = scmp.lt.s32.totalorder %s17_s13, %s17_s13 }
   0x3   :  { %p61_p0 = scmp.ne.s32.totalorder %s17_s13, %s60_s14  ;;  %p66_p2 = scmp.lt.s32.totalorder %s60_s14, %s60_s14 }
   0x5   :  { %p67_p3 = por %p66_p2, %p65_p1 }
   0x7   :  { %p68_p4 = pnand %p67_p3, %p61_p0 }
   0x9   :  { %71 = shalt.err (!%p68_p4)
}
   0xa   :  { %19 = dma.hbm_to_vmem [thread:$0]  %s107_s0, 128, %s17_s13, [#allocation4]  }
   0xb   :  { %72 = dma.done.wait [#allocation4], 128  }
   0xc   :  { %73 = vsyncadd [#allocation4], 4294967168  ;;  %v27_v0 = vld [vmem:[#allocation3] sm:$0xff]  ;;  %vm36_vm0 = vcmask 261120   ;;  %v41_v4 = vstv %s109_s2  ;;  %vm43_vm1 = vcmask 7168  }
   0xd   :  { %v50_v1 = vld [vmem:[%s108_s1] ss:$0 sm:$0xff] }
   0xe   :  { %v35_v2 = vmul.f32 %v50_v1, %v27_v0 }
  0x10   :  { %v37_v3 = vsel %vm36_vm0, %v35_v2, 0.0 }
  0x11   :  { %38 = vadd.xlane.f32.xlu0 %v37_v3 }
  0x9a   :  { %v39_v5 = vpop.xlane.xlu0 %38 }
  0x9b   :  { %v42_v6 = vadd.f32 %v41_v4, %v39_v5 }
  0x9d   :  { %44 = vst.msk [vmem:[%s110_s3] sm:$0xff] %vm43_vm1, %v42_v6 }
  0x9e   :  { %49 = vsyncpa [#allocation4], 1 }

</bundles_post_ra>
